<compile_context>
chip_gen: v6e
topology: v6e:2x2x1
jax: 0.10.0
libtpu: 0.0.40
codegen_flags: <defaults>
</compile_context>

<pallas_src>
import jax
import jax.numpy as jnp
from jax.experimental import pallas as pl
from jax.experimental.pallas import tpu as pltpu


def _dummy_layer_kernel(dummy_ref, x_ref, o_ref):
    # dummy_ref: (1, 1) f32 scalar in SMEM; x_ref / o_ref: (tile_rows, lanes) VMEM tiles.
    d = dummy_ref[0, 0].astype(x_ref.dtype)       # keep PyTorch op order/precision
    o_ref[...] = ((x_ref[...] + d) - d).astype(o_ref.dtype)


def _choose_lanes(n):
    """Widest lane-dense view (unmasked vst) that needs no padding copy."""
    for lanes in (1024, 512, 256, 128):
        if n % lanes == 0 and (n // lanes) % 8 == 0:
            return lanes, 0
    lanes = 128
    return lanes, (-n) % (8 * lanes)              # rare fallback for odd sizes


def dummy_layer_forward(x, dummy):
    """x: f32[B, C, H, W] (NCHW); dummy: f32[1] parameter. Returns f32[B, C, H, W]."""
    orig_shape = x.shape
    n = x.size
    lanes, pad = _choose_lanes(n)

    x_flat = jnp.reshape(x, (-1,))
    if pad:  # almost never taken for NCHW activations (divisible by 8*128)
        x_flat = jnp.concatenate([x_flat, jnp.zeros((pad,), x.dtype)])
    rows = x_flat.size // lanes
    x2d = jnp.reshape(x_flat, (rows, lanes))

    # ~1 MiB per buffer: safe on v7x's 64 MiB VMEM even with double-buffered
    # input + output (~4 MiB total), and big enough to hit ~85% of HBM roofline.
    itemsize = jnp.dtype(x.dtype).itemsize
    target_bytes = 1 << 20
    tile_rows = max(8, min(rows, (target_bytes // (lanes * itemsize)) // 8 * 8))
    num_tiles = pl.cdiv(rows, tile_rows)

    dummy2d = jnp.reshape(dummy, (1, 1)).astype(jnp.float32)

    out2d = pl.pallas_call(
        _dummy_layer_kernel,
        out_shape=jax.ShapeDtypeStruct((rows, lanes), x.dtype),
        grid_spec=pltpu.PrefetchScalarGridSpec(
            num_scalar_prefetch=0,
            grid=(num_tiles,),
            in_specs=[
                pl.BlockSpec((1, 1), lambda i: (0, 0),
                             memory_space=pltpu.SMEM),
                pl.BlockSpec((tile_rows, lanes), lambda i: (i, 0)),
            ],
            out_specs=pl.BlockSpec((tile_rows, lanes), lambda i: (i, 0)),
        ),
        compiler_params=pltpu.CompilerParams(
            # Independent tiles -> shard across both TensorCores on v7x.
            dimension_semantics=("parallel",)),
    )(dummy2d, x2d)

    if pad:
        out_flat = jnp.reshape(out2d, (-1,))[:n]
        return jnp.reshape(out_flat, orig_shape)
    return jnp.reshape(out2d, orig_shape)


if __name__ == "__main__":
    key = jax.random.PRNGKey(0)
    # Deterministic parameter init matching nn.Parameter(torch.ones(1)).
    dummy_param = jnp.ones((1,), dtype=jnp.float32)
    x = jax.random.normal(key, (2, 4, 16, 16), dtype=jnp.float32)

    out = dummy_layer_forward(x, dummy_param)
    out = jax.block_until_ready(out)

    ref = (x + dummy_param[0]) - dummy_param[0]
    assert out.shape == x.shape and out.dtype == x.dtype
    assert jnp.allclose(out, ref, atol=1e-6), "mismatch vs reference"
    print("KERNEL_OK")
</pallas_src>

<mosaic_0001>
module attributes {stable_mosaic.version = 11 : i64} {
  func.func @_dummy_layer_kernel(%arg0: i32, %arg1: memref<1x1xf32, #tpu.memory_space<smem>>, %arg2: memref<8x256xf32, #tpu.memory_space<vmem>>, %arg3: memref<8x256xf32, #tpu.memory_space<vmem>>) attributes {dimension_semantics = [#tpu.dimension_semantics<parallel>], iteration_bounds = array<i64: 1>, scalar_prefetch = 0 : i64, scratch_operands = 0 : i64, tpu.core_type = #tpu.core_type<tc>, window_params = [{transform_indices = @transform_0, window_bounds = array<i64: 1, 1>}, {transform_indices = @transform_1, window_bounds = array<i64: 8, 256>}, {transform_indices = @transform_2, window_bounds = array<i64: 8, 256>}]} {
    %c0 = arith.constant 0 : index
    %c0_0 = arith.constant 0 : index
    %0 = memref.load %arg1[%c0, %c0_0] : memref<1x1xf32, #tpu.memory_space<smem>>
    %c0_1 = arith.constant 0 : index
    %c0_2 = arith.constant 0 : index
    %1 = vector.load %arg2[%c0_1, %c0_2] : memref<8x256xf32, #tpu.memory_space<vmem>>, vector<8x256xf32>
    %2 = vector.broadcast %0 : f32 to vector<8x256xf32>
    %3 = arith.addf %1, %2 : vector<8x256xf32>
    %4 = vector.broadcast %0 : f32 to vector<8x256xf32>
    %5 = arith.subf %3, %4 : vector<8x256xf32>
    %c0_3 = arith.constant 0 : index
    %c0_4 = arith.constant 0 : index
    %6 = vector.load %arg3[%c0_3, %c0_4] : memref<8x256xf32, #tpu.memory_space<vmem>>, vector<8x256xf32>
    tpu.vector_store %arg3[%c0_3, %c0_4], %5 {strides = array<i32>} : memref<8x256xf32, #tpu.memory_space<vmem>>, vector<8x256xf32>,
    return
  }
  func.func @transform_0(%arg0: i32) -> (i32, i32) {
    %c0_i32 = arith.constant 0 : i32
    %c0_i32_0 = arith.constant 0 : i32
    %c0_i32_1 = arith.constant 0 : i32
    return %c0_i32, %c0_i32_0 : i32, i32
  }
  func.func @transform_1(%arg0: i32) -> (i32, i32) {
    %c0_i32 = arith.constant 0 : i32
    %c0_i32_0 = arith.constant 0 : i32
    return %arg0, %c0_i32 : i32, i32
  }
  func.func @transform_2(%arg0: i32) -> (i32, i32) {
    %c0_i32 = arith.constant 0 : i32
    %c0_i32_0 = arith.constant 0 : i32
    return %arg0, %c0_i32 : i32, i32
  }
}

</mosaic_0001>

<bundles_post_ra>
// kernel: tpu_custom_call.1
= control target key start
LH: loop header
LB: loop body
LE: loop exit
PB: predicated region body
PF: predicated region fallthrough
CT: control target
= control target key end

     0   :  { %8 = vsyncpa [#allocation4], 0  ;;  %s122_s0 = inlined_call_operand.<no memory space> [shape: f32[1,1], index: 0, kind: input, shape index: {}]   ;;  %s123_s1 = inlined_call_operand.hbm [shape: f32[8,256], index: 1, kind: input, shape index: {}]   ;;  %s124_s2 = inlined_call_operand.hbm [shape: f32[8,256], index: 2, kind: output, shape index: {}]  }
   0x1   :  { %9 = vsyncpa [#allocation5], 0  ;;  %s96_s9 = smov [#allocation3]  }
   0x2   :  { %s18_s10 = sshll.u32 %s96_s9, 4  ;;  %s19_s10 = int_to_ptr.vmem [resolvable:$true] %s18_s10 }
   0x3   :  { %s60_s11 = scalar_lea.vmem %s19_s10, 256  ;;  %p65_p1 = scmp.lt.s32.totalorder %s19_s10, %s19_s10 }
   0x4   :  { %p61_p0 = scmp.ne.s32.totalorder %s19_s10, %s60_s11  ;;  %p66_p2 = scmp.lt.s32.totalorder %s60_s11, %s60_s11 }
   0x6   :  { %p67_p3 = por %p66_p2, %p65_p1 }
   0x8   :  { %p68_p4 = pnand %p67_p3, %p61_p0 }
   0xa   :  { %71 = shalt.err (!%p68_p4)
}
   0xb   :  { %21 = dma.hbm_to_vmem [thread:$0]  %s123_s1, 256, %s19_s10, [#allocation4]  }
   0xc   :  { %92 = dma.done.wait [#allocation4], 256  }
   0xd   :  { %93 = vsyncadd [#allocation4], 4294967040  ;;  %v28_v0 = vstv %s122_s0  ;;  %v26_v1 = vld [vmem:[#allocation3] sm:$0xff]  ;;  %v27_v2 = vld [vmem:[#allocation3 + $0x8] sm:$0xff]  ;;  %s97_s16 = smov [#allocation6]  }
   0xe   :  { %s41_s17 = sshll.u32 %s97_s16, 4  ;;  %v29_v3 = vadd.f32 %v28_v0, %v26_v1  ;;  %v30_v4 = vadd.f32 %v28_v0, %v27_v2  ;;  %s42_s17 = int_to_ptr.vmem [resolvable:$true] %s41_s17 }
   0xf   :  { %s72_s18 = scalar_lea.vmem %s42_s17, 256  ;;  %p77_p6 = scmp.lt.s32.totalorder %s42_s17, %s42_s17 }
  0x10   :  { %v31_v5 = vsub.f32 %v29_v3, %v28_v0  ;;  %v32_v6 = vsub.f32 %v30_v4, %v28_v0  ;;  %p73_p5 = scmp.ne.s32.totalorder %s42_s17, %s72_s18  ;;  %p78_p7 = scmp.lt.s32.totalorder %s72_s18, %s72_s18 }
  0x12   :  { %33 = vst [vmem:[#allocation6] sm:$0xff] %v31_v5  ;;  %34 = vst [vmem:[#allocation6 + $0x8] sm:$0xff] %v32_v6  ;;  %p79_p8 = por %p78_p7, %p77_p6 }
  0x14   :  { %p80_p9 = pnand %p79_p8, %p73_p5 }
  0x16   :  { %83 = shalt.err (!%p80_p9)
}
  0x17   :  { %44 = dma.vmem_to_hbm [thread:$0]  %s42_s17, 256, %s124_s2, [#allocation5]  }
  0x18   :  { %94 = dma.done.wait [#allocation5], 256  }
  0x19   :  { %95 = vsyncadd [#allocation5], 4294967040 }
  0x1a   :  { %48 = vsyncpa [#allocation4], 1 }
  0x1b   :  { %49 = vsyncpa [#allocation5], 1 }

</bundles_post_ra>
